<compile_context>
chip_gen: v6e
topology: v6e:2x2x1
jax: 0.10.0
libtpu: 0.0.40
codegen_flags: <defaults>
</compile_context>

<pallas_src>
import jax
import jax.numpy as jnp
from jax import lax
from jax.experimental import pallas as pl
from jax.experimental.pallas import tpu as pltpu


def _make_cross_attention_kernel(with_mask: bool, num_kv_chunks: int, ck: int):
    def kernel(*refs):
        if with_mask:
            (q_ref, kv_ref, bias_ref,
             wq_ref, bq_ref, wk_ref, bk_ref,
             wv_ref, bv_ref, wo_ref, bo_ref,
             o_ref, k_scr, v_scr) = refs
        else:
            (q_ref, kv_ref,
             wq_ref, bq_ref, wk_ref, bk_ref,
             wv_ref, bv_ref, wo_ref, bo_ref,
             o_ref, k_scr, v_scr) = refs
            bias_ref = None

        dt = q_ref.dtype
        tq, E = q_ref.shape

        # --- K/V projections: once per batch element ------------------------
        # The q-tile grid axis is innermost and "arbitrary": k and v are
        # computed only at the first q-tile of each batch element and kept in
        # VMEM scratch for all remaining q-tiles (no recompute).
        @pl.when(pl.program_id(1) == 0)
        def _():
            kv = kv_ref[...]
            k_scr[...] = (jnp.dot(kv, wk_ref[...],
                                  preferred_element_type=jnp.float32)
                          + bk_ref[...]).astype(dt)
            v_scr[...] = (jnp.dot(kv, wv_ref[...],
                                  preferred_element_type=jnp.float32)
                          + bv_ref[...]).astype(dt)

        # --- Q projection (1/sqrt(E) already folded into wq/bq) --------------
        q = (jnp.dot(q_ref[...], wq_ref[...],
                     preferred_element_type=jnp.float32)
             + bq_ref[...]).astype(dt)

        # --- Online-softmax (flash) loop over kv chunks ----------------------
        def kv_chunk_step(i, carry):
            m, l, acc = carry
            start = i * ck
            if num_kv_chunks > 1:
                start = pl.multiple_of(start, ck)
            kc = k_scr[pl.ds(start, ck), :]
            vc = v_scr[pl.ds(start, ck), :]
            # q @ kc^T: contract on E for both operands (no kc relayout).
            s = lax.dot_general(q, kc,
                                dimension_numbers=(((1,), (1,)), ((), ())),
                                preferred_element_type=jnp.float32)
            if bias_ref is not None:
                # additive mask bias: 0 where attended, -1e30 where masked.
                s = s + bias_ref[i]
            m_new = jnp.maximum(m, jnp.max(s, axis=-1, keepdims=True))
            alpha = jnp.exp(m - m_new)
            p = jnp.exp(s - m_new)                       # unnormalized, <= 1
            l_new = alpha * l + jnp.sum(p, axis=-1, keepdims=True)
            acc_new = alpha * acc + jnp.dot(p.astype(dt), vc,
                                            preferred_element_type=jnp.float32)
            return m_new, l_new, acc_new

        m0 = jnp.full((tq, 1), -jnp.inf, jnp.float32)
        l0 = jnp.zeros((tq, 1), jnp.float32)
        acc0 = jnp.zeros((tq, E), jnp.float32)
        if num_kv_chunks == 1:
            m, l, acc = kv_chunk_step(0, (m0, l0, acc0))
        else:
            m, l, acc = lax.fori_loop(0, num_kv_chunks, kv_chunk_step,
                                      (m0, l0, acc0))

        # --- normalize AFTER the PV matmul: (tq, E) multiply, not (tq, Lk) ---
        inv = pl.reciprocal(l, approx=True)       # EUP vrcp (separate slot)
        inv = inv * (2.0 - l * inv)               # one Newton step -> ~f32
        ctx = (acc * inv).astype(dt)

        out = (jnp.dot(ctx, wo_ref[...], preferred_element_type=jnp.float32)
               + bo_ref[...])
        o_ref[...] = out.astype(o_ref.dtype)

        # TODO(synk): dropout with p > 0 would need pltpu.prng_random_bits; the
        # module default (p=0.0 / eval) is the identity, which is what we do.

    return kernel


def cross_attention(query, key_value, params, attention_mask=None):
    """query: (B, Lq, E); key_value: (B, Lk, E); attention_mask: (B, Lq, Lk) or None."""
    B, Lq, E = query.shape
    _, Lk, _ = key_value.shape
    dtype = query.dtype
    key_value = key_value.astype(dtype)

    # q-tile: fixed 256-row tiles (sweepable 128/256 per chip); Lq is padded up
    # to a multiple of tq so non-aligned Lq still pipelines; output is sliced.
    tq = Lq if Lq <= 256 else 256
    n_q = -(-Lq // tq)
    Lq_pad = n_q * tq

    # kv chunk size for the in-kernel online-softmax loop.
    ck = 512 if (Lk > 512 and Lk % 512 == 0) else Lk
    num_kv_chunks = Lk // ck

    if Lq_pad != Lq:
        query = jnp.pad(query, ((0, 0), (0, Lq_pad - Lq), (0, 0)))

    # Pre-transpose PyTorch-style (out, in) weights so the kernel does x @ W + b
    # and fold the 1/sqrt(E) score scale into the q projection (free).
    scale = 1.0 / (E ** 0.5)
    wq = (params["wq"].T * scale).astype(dtype)
    wk = params["wk"].T.astype(dtype)
    wv = params["wv"].T.astype(dtype)
    wo = params["wo"].T.astype(dtype)
    bq = (params["bq"] * scale).reshape(1, E).astype(jnp.float32)
    bk = params["bk"].reshape(1, E).astype(jnp.float32)
    bv = params["bv"].reshape(1, E).astype(jnp.float32)
    bo = params["bo"].reshape(1, E).astype(jnp.float32)

    with_mask = attention_mask is not None

    q_spec = pl.BlockSpec((None, tq, E), lambda b, qi: (b, qi, 0))
    kv_spec = pl.BlockSpec((None, Lk, E), lambda b, qi: (b, 0, 0))
    out_spec = pl.BlockSpec((None, tq, E), lambda b, qi: (b, qi, 0))
    w_spec = pl.BlockSpec((E, E), lambda b, qi: (0, 0))
    b_spec = pl.BlockSpec((1, E), lambda b, qi: (0, 0))

    in_specs = [q_spec, kv_spec]
    inputs = [query, key_value]
    if with_mask:
        # Additive bias: 0 where attended, -1e30 where masked; bf16 halves the
        # DMA vs f32 and avoids the int8 -> 32-bit relayout of compare+select.
        bias = jnp.where(attention_mask == 0, -1e30, 0.0).astype(jnp.bfloat16)
        if Lq_pad != Lq:
            bias = jnp.pad(bias, ((0, 0), (0, Lq_pad - Lq), (0, 0)))
        # Pre-split Lk into (num_kv_chunks, ck) and put the chunk axis first so
        # the kernel indexes it with a (well-supported) dynamic leading index.
        bias = bias.reshape(B, Lq_pad, num_kv_chunks, ck).transpose(0, 2, 1, 3)
        in_specs.append(pl.BlockSpec((None, num_kv_chunks, tq, ck),
                                     lambda b, qi: (b, 0, qi, 0)))
        inputs.append(bias)
    in_specs += [w_spec, b_spec, w_spec, b_spec, w_spec, b_spec, w_spec, b_spec]
    inputs += [wq, bq, wk, bk, wv, bv, wo, bo]

    # Explicit VMEM budget from the actual block / scratch sizes (+ headroom).
    # Grid-invariant weights are still double-buffered by the runtime; for very
    # large E (v7x's 64 MiB VMEM) single-buffering them or splitting the K/V
    # projection into its own pallas_call is the next lever.
    isz = jnp.dtype(dtype).itemsize
    est = (2 * tq * E * isz                             # q block
           + 2 * Lk * E * isz                           # kv block
           + (2 * tq * Lk * 2 if with_mask else 0)      # bf16 bias block
           + 2 * 4 * E * E * isz                        # four (E, E) weights
           + 2 * 4 * 8 * max(E, 128) * 4                # four (1, E) f32 biases
           + 2 * tq * E * isz                           # output block
           + 2 * Lk * E * isz                           # k / v VMEM scratch
           + (3 * tq * ck + 4 * tq * E) * 4)            # in-kernel f32 temps
    vmem_limit = int(min(128 * 1024 * 1024,
                         max(32 * 1024 * 1024, est * 3 // 2 + (4 << 20))))

    out = pl.pallas_call(
        _make_cross_attention_kernel(with_mask, num_kv_chunks, ck),
        out_shape=jax.ShapeDtypeStruct((B, Lq_pad, E), dtype),
        grid_spec=pltpu.PrefetchScalarGridSpec(
            num_scalar_prefetch=0,
            grid=(B, n_q),
            in_specs=in_specs,
            out_specs=out_spec,
            scratch_shapes=[pltpu.VMEM((Lk, E), dtype),    # k (per batch elem)
                            pltpu.VMEM((Lk, E), dtype)],   # v (per batch elem)
        ),
        compiler_params=pltpu.CompilerParams(
            # Batch is "parallel" (megacore-shardable; B >= 2 keeps both v7x
            # TensorCores busy).  The q-tile axis must be "arbitrary": it
            # reuses the per-batch K/V scratch computed at q-tile 0.
            dimension_semantics=("parallel", "arbitrary"),
            vmem_limit_bytes=vmem_limit),
    )(*inputs)

    if Lq_pad != Lq:
        out = out[:, :Lq, :]
    return out


def _init_params(key, embed_dim):
    ks = jax.random.split(key, 8)
    bound = 1.0 / jnp.sqrt(embed_dim)
    def lin(kw, kb):
        w = jax.random.uniform(kw, (embed_dim, embed_dim), jnp.float32, -bound, bound)
        b = jax.random.uniform(kb, (embed_dim,), jnp.float32, -bound, bound)
        return w, b
    wq, bq = lin(ks[0], ks[1])
    wk, bk = lin(ks[2], ks[3])
    wv, bv = lin(ks[4], ks[5])
    wo, bo = lin(ks[6], ks[7])
    return dict(wq=wq, bq=bq, wk=wk, bk=bk, wv=wv, bv=bv, wo=wo, bo=bo)


def _reference(query, key_value, params, attention_mask=None):
    """Plain-JAX reference (HIGHEST matmul precision) of the PyTorch forward."""
    E = query.shape[-1]
    hp = jax.lax.Precision.HIGHEST
    q = jnp.einsum("ble,oe->blo", query, params["wq"], precision=hp) + params["bq"]
    k = jnp.einsum("ble,oe->blo", key_value, params["wk"], precision=hp) + params["bk"]
    v = jnp.einsum("ble,oe->blo", key_value, params["wv"], precision=hp) + params["bv"]
    attn = jnp.einsum("bqe,bke->bqk", q, k, precision=hp) / (E ** 0.5)
    if attention_mask is not None:
        attn = jnp.where(attention_mask == 0, -jnp.inf, attn)
    attn = jax.nn.softmax(attn, axis=-1)
    out = jnp.einsum("bqk,bke->bqe", attn, v, precision=hp)
    return jnp.einsum("bqe,oe->bqo", out, params["wo"], precision=hp) + params["bo"]


if __name__ == "__main__":
    key = jax.random.PRNGKey(0)

    # ---- small demo shapes -------------------------------------------------
    B, Lq, Lk, E = 2, 8, 8, 32
    k1, k2, k3, k4 = jax.random.split(key, 4)
    query = jax.random.normal(k1, (B, Lq, E), jnp.float32)
    key_value = jax.random.normal(k2, (B, Lk, E), jnp.float32)
    params = _init_params(k3, E)

    # Mask: allow everything except the last kv token of the second batch elem.
    mask = jnp.ones((B, Lq, Lk), jnp.float32)
    mask = mask.at[1, :, -1].set(0.0)

    # f32, masked
    out = jax.block_until_ready(cross_attention(query, key_value, params, mask))
    ref = _reference(query, key_value, params, mask)
    assert out.shape == (B, Lq, E)
    assert jnp.allclose(out, ref, atol=5e-3, rtol=1e-2), (
        f"masked f32: max abs err = {jnp.max(jnp.abs(out - ref))}")

    # f32, no mask (exercises the bias-free kernel variant — no mask DMA stream)
    out_nm = jax.block_until_ready(cross_attention(query, key_value, params, None))
    ref_nm = _reference(query, key_value, params, None)
    assert jnp.allclose(out_nm, ref_nm, atol=5e-3, rtol=1e-2), (
        f"unmasked f32: max abs err = {jnp.max(jnp.abs(out_nm - ref_nm))}")

    # bf16 activations/weights on the native MXU bf16 path, f32 accumulation.
    out_bf16 = jax.block_until_ready(
        cross_attention(query.astype(jnp.bfloat16),
                        key_value.astype(jnp.bfloat16), params, mask))
    assert out_bf16.dtype == jnp.bfloat16
    assert jnp.allclose(out_bf16.astype(jnp.float32), ref, atol=1e-1, rtol=1e-1), (
        f"bf16: max abs err = {jnp.max(jnp.abs(out_bf16.astype(jnp.float32) - ref))}")

    # ---- moderate shapes: exercises multi-q-tile K/V reuse, Lq padding and
    #      the chunked online-softmax inner loop ------------------------------
    B2, Lq2, Lk2, E2 = 2, 320, 1024, 128
    k5, k6, k7 = jax.random.split(k4, 3)
    query2 = jax.random.normal(k5, (B2, Lq2, E2), jnp.float32)
    key_value2 = jax.random.normal(k6, (B2, Lk2, E2), jnp.float32)
    params2 = _init_params(k7, E2)
    mask2 = jnp.ones((B2, Lq2, Lk2), jnp.float32)
    mask2 = mask2.at[:, :, 900:].set(0.0)   # mask the last 124 kv tokens

    out2 = jax.block_until_ready(cross_attention(query2, key_value2, params2, mask2))
    ref2 = _reference(query2, key_value2, params2, mask2)
    assert out2.shape == (B2, Lq2, E2)
    assert jnp.allclose(out2, ref2, atol=2e-3, rtol=2e-2), (
        f"moderate f32: max abs err = {jnp.max(jnp.abs(out2 - ref2))}")

    print("KERNEL_OK")
</pallas_src>

<mosaic_0001>
module attributes {stable_mosaic.version = 11 : i64} {
  func.func @kernel(%arg0: i32, %arg1: i32, %arg2: memref<1x8x32xf32, #tpu.memory_space<vmem>>, %arg3: memref<1x8x32xf32, #tpu.memory_space<vmem>>, %arg4: memref<1x1x8x8xbf16, #tpu.memory_space<vmem>>, %arg5: memref<32x32xf32, #tpu.memory_space<vmem>>, %arg6: memref<1x32xf32, #tpu.memory_space<vmem>>, %arg7: memref<32x32xf32, #tpu.memory_space<vmem>>, %arg8: memref<1x32xf32, #tpu.memory_space<vmem>>, %arg9: memref<32x32xf32, #tpu.memory_space<vmem>>, %arg10: memref<1x32xf32, #tpu.memory_space<vmem>>, %arg11: memref<32x32xf32, #tpu.memory_space<vmem>>, %arg12: memref<1x32xf32, #tpu.memory_space<vmem>>, %arg13: memref<1x8x32xf32, #tpu.memory_space<vmem>>, %arg14: memref<8x32xf32, #tpu.memory_space<vmem>>, %arg15: memref<8x32xf32, #tpu.memory_space<vmem>>) attributes {dimension_semantics = [#tpu.dimension_semantics<parallel>, #tpu.dimension_semantics<arbitrary>], iteration_bounds = array<i64: 2, 1>, scalar_prefetch = 0 : i64, scratch_operands = 2 : i64, tpu.core_type = #tpu.core_type<tc>, window_params = [{transform_indices = @transform_0, window_bounds = array<i64: 1, 8, 32>}, {transform_indices = @transform_1, window_bounds = array<i64: 1, 8, 32>}, {transform_indices = @transform_2, window_bounds = array<i64: 1, 1, 8, 8>}, {pipeline_mode = #tpu.pipeline_mode<synchronous>, transform_indices = @transform_3, window_bounds = array<i64: 32, 32>}, {pipeline_mode = #tpu.pipeline_mode<synchronous>, transform_indices = @transform_4, window_bounds = array<i64: 1, 32>}, {pipeline_mode = #tpu.pipeline_mode<synchronous>, transform_indices = @transform_5, window_bounds = array<i64: 32, 32>}, {pipeline_mode = #tpu.pipeline_mode<synchronous>, transform_indices = @transform_6, window_bounds = array<i64: 1, 32>}, {pipeline_mode = #tpu.pipeline_mode<synchronous>, transform_indices = @transform_7, window_bounds = array<i64: 32, 32>}, {pipeline_mode = #tpu.pipeline_mode<synchronous>, transform_indices = @transform_8, window_bounds = array<i64: 1, 32>}, {pipeline_mode = #tpu.pipeline_mode<synchronous>, transform_indices = @transform_9, window_bounds = array<i64: 32, 32>}, {pipeline_mode = #tpu.pipeline_mode<synchronous>, transform_indices = @transform_10, window_bounds = array<i64: 1, 32>}, {transform_indices = @transform_11, window_bounds = array<i64: 1, 8, 32>}]} {
    %c0_i32 = arith.constant 0 : i32
    %0 = arith.cmpi eq, %arg1, %c0_i32 : i32
    %1 = arith.extui %0 : i1 to i32
    %c0_i32_0 = arith.constant 0 : i32
    %2 = arith.cmpi ne, %1, %c0_i32_0 : i32
    scf.if %2 {
      %c0_31 = arith.constant 0 : index
      %c0_32 = arith.constant 0 : index
      %c0_33 = arith.constant 0 : index
      %51 = vector.load %arg3[%c0_31, %c0_32, %c0_33] : memref<1x8x32xf32, #tpu.memory_space<vmem>>, vector<1x8x32xf32>
      %52 = vector.shape_cast %51 : vector<1x8x32xf32> to vector<8x32xf32>
      %c0_34 = arith.constant 0 : index
      %c0_35 = arith.constant 0 : index
      %53 = vector.load %arg7[%c0_34, %c0_35] : memref<32x32xf32, #tpu.memory_space<vmem>>, vector<32x32xf32>
      %cst_36 = arith.constant dense<0.000000e+00> : vector<8x32xf32>
      %54 = tpu.matmul %52, %53, %cst_36 {dimension_numbers = #tpu.dot_dimension_numbers<[1], [0], [0], [1], [0, 0, 1, 1], [], []>} : vector<8x32xf32>, vector<32x32xf32>, vector<8x32xf32> -> vector<8x32xf32>
      %c0_37 = arith.constant 0 : index
      %c0_38 = arith.constant 0 : index
      %55 = vector.load %arg8[%c0_37, %c0_38] : memref<1x32xf32, #tpu.memory_space<vmem>>, vector<1x32xf32>
      %56 = vector.broadcast %55 : vector<1x32xf32> to vector<8x32xf32>
      %57 = arith.addf %54, %56 : vector<8x32xf32>
      %c0_39 = arith.constant 0 : index
      %c0_40 = arith.constant 0 : index
      %58 = vector.load %arg14[%c0_39, %c0_40] : memref<8x32xf32, #tpu.memory_space<vmem>>, vector<8x32xf32>
      tpu.vector_store %arg14[%c0_39, %c0_40], %57 {strides = array<i32>} : memref<8x32xf32, #tpu.memory_space<vmem>>, vector<8x32xf32>,
      %c0_41 = arith.constant 0 : index
      %c0_42 = arith.constant 0 : index
      %59 = vector.load %arg9[%c0_41, %c0_42] : memref<32x32xf32, #tpu.memory_space<vmem>>, vector<32x32xf32>
      %cst_43 = arith.constant dense<0.000000e+00> : vector<8x32xf32>
      %60 = tpu.matmul %52, %59, %cst_43 {dimension_numbers = #tpu.dot_dimension_numbers<[1], [0], [0], [1], [0, 0, 1, 1], [], []>} : vector<8x32xf32>, vector<32x32xf32>, vector<8x32xf32> -> vector<8x32xf32>
      %c0_44 = arith.constant 0 : index
      %c0_45 = arith.constant 0 : index
      %61 = vector.load %arg10[%c0_44, %c0_45] : memref<1x32xf32, #tpu.memory_space<vmem>>, vector<1x32xf32>
      %62 = vector.broadcast %61 : vector<1x32xf32> to vector<8x32xf32>
      %63 = arith.addf %60, %62 : vector<8x32xf32>
      %c0_46 = arith.constant 0 : index
      %c0_47 = arith.constant 0 : index
      %64 = vector.load %arg15[%c0_46, %c0_47] : memref<8x32xf32, #tpu.memory_space<vmem>>, vector<8x32xf32>
      tpu.vector_store %arg15[%c0_46, %c0_47], %63 {strides = array<i32>} : memref<8x32xf32, #tpu.memory_space<vmem>>, vector<8x32xf32>,
    } else {
    }
    %c0 = arith.constant 0 : index
    %c0_1 = arith.constant 0 : index
    %c0_2 = arith.constant 0 : index
    %3 = vector.load %arg2[%c0, %c0_1, %c0_2] : memref<1x8x32xf32, #tpu.memory_space<vmem>>, vector<1x8x32xf32>
    %4 = vector.shape_cast %3 : vector<1x8x32xf32> to vector<8x32xf32>
    %c0_3 = arith.constant 0 : index
    %c0_4 = arith.constant 0 : index
    %5 = vector.load %arg5[%c0_3, %c0_4] : memref<32x32xf32, #tpu.memory_space<vmem>>, vector<32x32xf32>
    %cst = arith.constant dense<0.000000e+00> : vector<8x32xf32>
    %6 = tpu.matmul %4, %5, %cst {dimension_numbers = #tpu.dot_dimension_numbers<[1], [0], [0], [1], [0, 0, 1, 1], [], []>} : vector<8x32xf32>, vector<32x32xf32>, vector<8x32xf32> -> vector<8x32xf32>
    %c0_5 = arith.constant 0 : index
    %c0_6 = arith.constant 0 : index
    %7 = vector.load %arg6[%c0_5, %c0_6] : memref<1x32xf32, #tpu.memory_space<vmem>>, vector<1x32xf32>
    %8 = vector.broadcast %7 : vector<1x32xf32> to vector<8x32xf32>
    %9 = arith.addf %6, %8 : vector<8x32xf32>
    %cst_7 = arith.constant 0xFF800000 : f32
    %10 = vector.broadcast %cst_7 : f32 to vector<8x1xf32>
    %cst_8 = arith.constant 0.000000e+00 : f32
    %11 = vector.broadcast %cst_8 : f32 to vector<8x1xf32>
    %cst_9 = arith.constant 0.000000e+00 : f32
    %12 = vector.broadcast %cst_9 : f32 to vector<8x32xf32>
    %c0_10 = arith.constant 0 : index
    %c0_11 = arith.constant 0 : index
    %13 = vector.load %arg14[%c0_10, %c0_11] : memref<8x32xf32, #tpu.memory_space<vmem>>, vector<8x32xf32>
    %c0_12 = arith.constant 0 : index
    %c0_13 = arith.constant 0 : index
    %14 = vector.load %arg15[%c0_12, %c0_13] : memref<8x32xf32, #tpu.memory_space<vmem>>, vector<8x32xf32>
    %cst_14 = arith.constant dense<0.000000e+00> : vector<8x8xf32>
    %15 = tpu.matmul %9, %13, %cst_14 {dimension_numbers = #tpu.dot_dimension_numbers<[1], [1], [0], [0], [0, 0, 1, 0], [], []>} : vector<8x32xf32>, vector<8x32xf32>, vector<8x8xf32> -> vector<8x8xf32>
    %c0_15 = arith.constant 0 : index
    %c0_16 = arith.constant 0 : index
    %c0_17 = arith.constant 0 : index
    %c0_18 = arith.constant 0 : index
    %16 = vector.load %arg4[%c0_15, %c0_16, %c0_17, %c0_18] : memref<1x1x8x8xbf16, #tpu.memory_space<vmem>>, vector<1x1x8x8xbf16>
    %17 = vector.shape_cast %16 : vector<1x1x8x8xbf16> to vector<8x8xbf16>
    %18 = arith.extf %17 : vector<8x8xbf16> to vector<8x8xf32>
    %19 = arith.addf %15, %18 : vector<8x8xf32>
    %cst_19 = arith.constant dense<0xFF800000> : vector<8xf32>
    %20 = vector.multi_reduction <maximumf>, %19, %cst_19 [1] : vector<8x8xf32> to vector<8xf32>
    %21 = vector.shape_cast %20 : vector<8xf32> to vector<8x1xf32>
    %22 = arith.maximumf %10, %21 : vector<8x1xf32>
    %23 = arith.subf %10, %22 : vector<8x1xf32>
    %24 = math.exp %23 : vector<8x1xf32>
    %25 = vector.broadcast %22 : vector<8x1xf32> to vector<8x8xf32>
    %26 = arith.subf %19, %25 : vector<8x8xf32>
    %27 = math.exp %26 : vector<8x8xf32>
    %28 = arith.mulf %24, %11 : vector<8x1xf32>
    %cst_20 = arith.constant dense<0.000000e+00> : vector<8xf32>
    %29 = vector.multi_reduction <add>, %27, %cst_20 [1] : vector<8x8xf32> to vector<8xf32>
    %30 = vector.shape_cast %29 : vector<8xf32> to vector<8x1xf32>
    %31 = arith.addf %28, %30 : vector<8x1xf32>
    %32 = vector.broadcast %24 : vector<8x1xf32> to vector<8x32xf32>
    %33 = arith.mulf %32, %12 : vector<8x32xf32>
    %cst_21 = arith.constant dense<0.000000e+00> : vector<8x32xf32>
    %34 = tpu.matmul %27, %14, %cst_21 {dimension_numbers = #tpu.dot_dimension_numbers<[1], [0], [0], [1], [0, 0, 1, 1], [], []>} : vector<8x8xf32>, vector<8x32xf32>, vector<8x32xf32> -> vector<8x32xf32>
    %35 = arith.addf %33, %34 : vector<8x32xf32>
    %36 = tpu.reciprocal %31 {approx = true} : vector<8x1xf32> -> vector<8x1xf32>
    %37 = arith.mulf %31, %36 : vector<8x1xf32>
    %cst_22 = arith.constant 2.000000e+00 : f32
    %38 = vector.broadcast %cst_22 : f32 to vector<8x1xf32>
    %39 = arith.subf %38, %37 : vector<8x1xf32>
    %40 = arith.mulf %36, %39 : vector<8x1xf32>
    %41 = vector.broadcast %40 : vector<8x1xf32> to vector<8x32xf32>
    %42 = arith.mulf %35, %41 : vector<8x32xf32>
    %c0_23 = arith.constant 0 : index
    %c0_24 = arith.constant 0 : index
    %43 = vector.load %arg11[%c0_23, %c0_24] : memref<32x32xf32, #tpu.memory_space<vmem>>, vector<32x32xf32>
    %cst_25 = arith.constant dense<0.000000e+00> : vector<8x32xf32>
    %44 = tpu.matmul %42, %43, %cst_25 {dimension_numbers = #tpu.dot_dimension_numbers<[1], [0], [0], [1], [0, 0, 1, 1], [], []>} : vector<8x32xf32>, vector<32x32xf32>, vector<8x32xf32> -> vector<8x32xf32>
    %c0_26 = arith.constant 0 : index
    %c0_27 = arith.constant 0 : index
    %45 = vector.load %arg12[%c0_26, %c0_27] : memref<1x32xf32, #tpu.memory_space<vmem>>, vector<1x32xf32>
    %46 = vector.broadcast %45 : vector<1x32xf32> to vector<8x32xf32>
    %47 = arith.addf %44, %46 : vector<8x32xf32>
    %c0_28 = arith.constant 0 : index
    %c0_29 = arith.constant 0 : index
    %c0_30 = arith.constant 0 : index
    %48 = vector.load %arg13[%c0_28, %c0_29, %c0_30] : memref<1x8x32xf32, #tpu.memory_space<vmem>>, vector<1x8x32xf32>
    %49 = vector.shape_cast %48 : vector<1x8x32xf32> to vector<8x32xf32>
    %50 = vector.shape_cast %47 : vector<8x32xf32> to vector<1x8x32xf32>
    tpu.vector_store %arg13[%c0_28, %c0_29, %c0_30], %50 {strides = array<i32>} : memref<1x8x32xf32, #tpu.memory_space<vmem>>, vector<1x8x32xf32>,
    return
  }
  func.func @transform_0(%arg0: i32, %arg1: i32) -> (i32, i32, i32) {
    %c0_i32 = arith.constant 0 : i32
    %c0_i32_0 = arith.constant 0 : i32
    return %arg0, %arg1, %c0_i32 : i32, i32, i32
  }
  func.func @transform_1(%arg0: i32, %arg1: i32) -> (i32, i32, i32) {
    %c0_i32 = arith.constant 0 : i32
    %c0_i32_0 = arith.constant 0 : i32
    %c0_i32_1 = arith.constant 0 : i32
    return %arg0, %c0_i32, %c0_i32_0 : i32, i32, i32
  }
  func.func @transform_2(%arg0: i32, %arg1: i32) -> (i32, i32, i32, i32) {
    %c0_i32 = arith.constant 0 : i32
    %c0_i32_0 = arith.constant 0 : i32
    %c0_i32_1 = arith.constant 0 : i32
    return %arg0, %c0_i32, %arg1, %c0_i32_0 : i32, i32, i32, i32
  }
  func.func @transform_3(%arg0: i32, %arg1: i32) -> (i32, i32) {
    %c0_i32 = arith.constant 0 : i32
    %c0_i32_0 = arith.constant 0 : i32
    %c0_i32_1 = arith.constant 0 : i32
    return %c0_i32, %c0_i32_0 : i32, i32
  }
  func.func @transform_4(%arg0: i32, %arg1: i32) -> (i32, i32) {
    %c0_i32 = arith.constant 0 : i32
    %c0_i32_0 = arith.constant 0 : i32
    %c0_i32_1 = arith.constant 0 : i32
    return %c0_i32, %c0_i32_0 : i32, i32
  }
  func.func @transform_5(%arg0: i32, %arg1: i32) -> (i32, i32) {
    %c0_i32 = arith.constant 0 : i32
    %c0_i32_0 = arith.constant 0 : i32
    %c0_i32_1 = arith.constant 0 : i32
    return %c0_i32, %c0_i32_0 : i32, i32
  }
  func.func @transform_6(%arg0: i32, %arg1: i32) -> (i32, i32) {
    %c0_i32 = arith.constant 0 : i32
    %c0_i32_0 = arith.constant 0 : i32
    %c0_i32_1 = arith.constant 0 : i32
    return %c0_i32, %c0_i32_0 : i32, i32
  }
  func.func @transform_7(%arg0: i32, %arg1: i32) -> (i32, i32) {
    %c0_i32 = arith.constant 0 : i32
    %c0_i32_0 = arith.constant 0 : i32
    %c0_i32_1 = arith.constant 0 : i32
    return %c0_i32, %c0_i32_0 : i32, i32
  }
  func.func @transform_8(%arg0: i32, %arg1: i32) -> (i32, i32) {
    %c0_i32 = arith.constant 0 : i32
    %c0_i32_0 = arith.constant 0 : i32
    %c0_i32_1 = arith.constant 0 : i32
    return %c0_i32, %c0_i32_0 : i32, i32
  }
  func.func @transform_9(%arg0: i32, %arg1: i32) -> (i32, i32) {
    %c0_i32 = arith.constant 0 : i32
    %c0_i32_0 = arith.constant 0 : i32
    %c0_i32_1 = arith.constant 0 : i32
    return %c0_i32, %c0_i32_0 : i32, i32
  }
  func.func @transform_10(%arg0: i32, %arg1: i32) -> (i32, i32) {
    %c0_i32 = arith.constant 0 : i32
    %c0_i32_0 = arith.constant 0 : i32
    %c0_i32_1 = arith.constant 0 : i32
    return %c0_i32, %c0_i32_0 : i32, i32
  }
  func.func @transform_11(%arg0: i32, %arg1: i32) -> (i32, i32, i32) {
    %c0_i32 = arith.constant 0 : i32
    %c0_i32_0 = arith.constant 0 : i32
    return %arg0, %arg1, %c0_i32 : i32, i32, i32
  }
}

</mosaic_0001>

<bundles_post_ra>
// kernel: tpu_custom_call.1
= control target key start
LH: loop header
LB: loop body
LE: loop exit
PB: predicated region body
PF: predicated region fallthrough
CT: control target
= control target key end

     0   :  { %s2154_s0 = inlined_call_operand.hbm [shape: f32[2,8,32], index: 0, kind: input, shape index: {}]   ;;  %s2155_s1 = inlined_call_operand.hbm [shape: f32[2,8,32], index: 1, kind: input, shape index: {}]   ;;  %s2156_s2 = inlined_call_operand.hbm [shape: bf16[2,1,8,8], index: 2, kind: input, shape index: {}]   ;;  %s2157_s3 = inlined_call_operand.hbm [shape: f32[32,32], index: 3, kind: input, shape index: {}]   ;;  %s2158_s4 = inlined_call_operand.vmem [shape: f32[1,32], index: 4, kind: input, shape index: {}]   ;;  %s2159_s5 = inlined_call_operand.hbm [shape: f32[32,32], index: 5, kind: input, shape index: {}]   ;;  %s2160_s6 = inlined_call_operand.vmem [shape: f32[1,32], index: 6, kind: input, shape index: {}]   ;;  %s2161_s7 = inlined_call_operand.hbm [shape: f32[32,32], index: 7, kind: input, shape index: {}]   ;;  %s2162_s8 = inlined_call_operand.vmem [shape: f32[1,32], index: 8, kind: input, shape index: {}]   ;;  %s2163_s9 = inlined_call_operand.hbm [shape: f32[32,32], index: 9, kind: input, shape index: {}]   ;;  %s2164_s10 = inlined_call_operand.vmem [shape: f32[1,32], index: 10, kind: input, shape index: {}]   ;;  %s2165_s11 = inlined_call_operand.hbm [shape: f32[2,8,32], index: 11, kind: output, shape index: {}]  }
   0x1   :  { %2182 = sst [smem:[#allocation28_spill]] %s2155_s1 }
   0x2   :  { %2183 = sst [smem:[#allocation29_spill]] %s2157_s3 }
   0x3   :  { %2184 = sst [smem:[#allocation30_spill]] %s2159_s5 }
   0x4   :  { %2185 = sst [smem:[#allocation31_spill]] %s2161_s7 }
   0x5   :  { %2186 = sst [smem:[#allocation32_spill]] %s2164_s10 }
   0x6   :  { %2187 = sst [smem:[#allocation33_spill]] %s2165_s11 }
   0x7   :  { %16 = vsyncpa [#allocation5], 0 }
   0x8   :  { %18 = vsyncpa [#allocation5 + $0x1], 0 }
   0x9   :  { %19 = vsyncpa [#allocation8], 0 }
   0xa   :  { %21 = vsyncpa [#allocation8 + $0x1], 0 }
   0xb   :  { %22 = vsyncpa [#allocation11], 0 }
   0xc   :  { %23 = vsyncpa [#allocation14], 0 }
   0xd   :  { %24 = vsyncpa [#allocation6], 0 }
   0xe   :  { %26 = vsyncpa [#allocation6 + $0x1], 0  ;;  %s1839_s17 = smov 0   ;;  %s1841_s18 = smov 0  }
   0xf   :  { %s1843_s19 = smov 0   ;;  %s1845_s20 = smov 0  }
  0x10   :  { %s1847_s21 = smov 0   ;;  %s1849_s22 = smov 0  }
  0x11 LB: > { %2188 = sst [smem:[#allocation22_spill]] %s1745_s17  ;;  %s1870_s23 = sadd.s32 4294967295, %s1765_s22   ;;  %s1765_s22 = sphi %s1849_s22, %s32_s22   ;;  %s1761_s21 = sphi %s1847_s21, %s2230_s21   ;;  %s1757_s20 = sphi %s1845_s20, %s2229_s20   ;;  %s1753_s19 = sphi %s1843_s19, %s2225_s19   ;;  %s1749_s18 = sphi %s1841_s18, %s2228_s18   ;;  %s1745_s17 = sphi %s1839_s17, %s2227_s17  }
  0x12   : > { %2189 = sst [smem:[#allocation23_spill]] %s1753_s19  ;;  %p1248_p0 = scmp.ge.s32.totalorder %s1765_s22, 1 }
  0x13   : > { %2190 = sst [smem:[#allocation24_spill]] %s1765_s22  ;;  %p2170_p1 = scmp.eq.s32.totalorder %s1870_s23, 0 }
  0x14   : > { %p327_p2 = scmp.lt.s32.totalorder %s1765_s22, 3  ;;  %s1767_s25 = smov [#allocation10]  }
  0x15   : > { %s339_s26 = sshll.u32 %s1767_s25, 4  ;;  %s1768_s28 = smov [#allocation13]   ;;  %s340_s26 = int_to_ptr.vmem [resolvable:$true] %s339_s26 }
  0x16   : > { %p1875_p3 = pnand %p1248_p0, %p327_p2  ;;  %s371_s29 = sshll.u32 %s1768_s28, 4  ;;  %s372_s29 = int_to_ptr.vmem [resolvable:$true] %s371_s29 }
  0x17   : > { %s1496_s30 = scalar_lea.vmem %s340_s26, 512  ;;  %p1504_p11 = scmp.lt.s32.totalorder %s340_s26, %s340_s26 }
  0x18   : > { %p1386_p4 = pneg %p1875_p3  ;;  %p1497_p8 = scmp.ne.s32.totalorder %s340_s26, %s1496_s30 }
  0x19   : > { %p1505_p12 = scmp.lt.s32.totalorder %s1496_s30, %s1496_s30 }
  0x1a   : > { %p1884_p6 = pnand %p1386_p4, %p2170_p1 }
  0x1b   : > { %p1506_p13 = por %p1505_p12, %p1504_p11 }
  0x1c   : > { %p2178_p7 = pneg %p1884_p6 }
  0x1e   : > { %p1499_p9 = pnand %p1497_p8, %p2178_p7 }
  0x20   : > { %p1500_p10 = pneg %p1499_p9 }
  0x22   : > { %p1507_p0 = pnand %p1506_p13, %p1500_p10 }
  0x24   : > { %1510 = shalt.err (!%p1507_p0)
}
  0x25   : > { %s2166_s12 = smov 128   ;;  %s2168_s13 = smov 8  }
  0x26   : > { %s2193_s3 = sld [smem:[#allocation29_spill]]  ;;  %s1522_s16 = scalar_lea.vmem %s372_s29, 512 }
  0x27   : > { %p1523_p2 = scmp.ne.s32.totalorder %s372_s29, %s1522_s16  ;;  %p1530_p9 = scmp.lt.s32.totalorder %s372_s29, %s372_s29 }
  0x28   : > { %p1531_p10 = scmp.lt.s32.totalorder %s1522_s16, %s1522_s16 }
  0x29   : > { %p1525_p4 = pnand %p1523_p2, %p2178_p7 }
  0x2a   : > { %p1532_p11 = por %p1531_p10, %p1530_p9 }
  0x2b   : > { %p1526_p8 = pneg %p1525_p4 }
  0x2c   : > { %1389 = dma.hbm_to_vmem [thread:$0]  (!%p1884_p6), %s2193_s3, 512, %s340_s26, [#allocation11], %s2166_s12, %s2166_s12, %s2168_s13  }
  0x2d   : > { %p1533_p12 = pnand %p1532_p11, %p1526_p8 }
  0x2f   : > { %1536 = shalt.err (!%p1533_p12)
}
  0x30   : > { %s2194_s7 = sld [smem:[#allocation31_spill]]  ;;  %s1247_s26 = sadd.s32 4294967294, %s1765_s22  }
  0x31   : > { %s44_s30 = sadd.s32 1, %s1761_s21  ;;  %s53_s14 = sadd.s32 1, %s1753_s19 }
  0x32   : > { %p46_p13 = scmp.ge.s32.totalorder %s44_s30, 2  ;;  %p60_p0 = scmp.ne.s32.totalorder %s1753_s19, %s1749_s18 }
  0x33   : > { %p61_p2 = scmp.eq.s32.totalorder %s1765_s22, 0  ;;  %p66_p8 = scmp.ne.s32.totalorder %s1749_s18, %s1745_s17 }
  0x34   : > { %s2232_s30 = smov (%p46_p13, %s44_s30), 0  ;;  %p314_p9 = scmp.eq.s32.totalorder %s1870_s23, 1 }
  0x35   : > { %2195 = sst [smem:[#allocation25_spill]] %s2232_s30  ;;  %p1920_p4 = por %p61_p2, %p60_p0 }
  0x36   : > { %1395 = dma.hbm_to_vmem [thread:$0]  (!%p1884_p6), %s2194_s7, 512, %s372_s29, [#allocation14], %s2166_s12, %s2166_s12, %s2168_s13  }
  0x37   : > { %s48_s29 = ssub.s32 %s1761_s21, %s2232_s30  ;;  %p1931_p11 = por %p2170_p1, %p66_p8 }
  0x38   : > { %p51_p10 = scmp.eq.s32.totalorder %s48_s29, 0  ;;  %p1935_p12 = por %p314_p9, %p60_p0 }
  0x39   : > { %p320_p13 = scmp.eq.s32.totalorder %s1247_s26, 1  ;;  %p1417_p5 = scmp.lt.s32.totalorder %s1765_s22, 2 }
  0x3a   : > { %s2198_s25 = scalar_select %p1935_p12, 1, 0 }
  0x3b   : > { %s1940_s28 = scalar_select %p51_p10, %s1753_s19, %s53_s14  }
  0x3c   : > { %p1942_p2 = por %p320_p13, %p66_p8  ;;  %s1948_s13 = sand.u32 1, %s1753_s19  }
  0x3d   : > { %2199 = sst [smem:[#allocation26_spill]] %s1940_s28  ;;  %s1255_s29 = sshll.u32 %s1761_s21, 7 }
  0x3e   : > { %s2200_s12 = scalar_select %p1942_p2, 1, 0 }
  0x3f   : > { %s2179_s3 = sshll.u32 %s1948_s13, 3  ;;  %p1954_p1 = pnand %p1417_p5, %p1920_p4 }
  0x40   : > { %2201 = sst [smem:[#allocation27_spill]] %s2200_s12  ;;  %s423_s26 = sand.u32 1, %s1765_s22  }
  0x41   : > { %s2203_s1 = sld [smem:[#allocation28_spill]]  ;;  %s427_s19 = scalar_lea.vmem [#allocation7], %s2179_s3 }
  0x42   : > { %s434_s12 = sshll.u32 %s427_s19, 4  ;;  %s1966_s17 = scalar_lea.sflag [#allocation8], %s423_s26  ;;  %s435_s12 = int_to_ptr.vmem [resolvable:$true] %s434_s12 }
  0x43   : > { %p2180_p0 = pneg %p1954_p1  ;;  %s1550_s15 = scalar_lea.vmem %s435_s12, 128 }
  0x44   : > { %p1551_p5 = scmp.ne.s32.totalorder %s435_s12, %s1550_s15  ;;  %s1771_s22 = smov [#allocation7]  }
  0x45   : > { %s1555_s11 = sshll.u32 %s1771_s22, 4  ;;  %s1556_s11 = int_to_ptr.vmem [resolvable:$false] %s1555_s11 }
  0x46   : > { %p1553_p4 = pnand %p1551_p5, %p2180_p0  ;;  %s1557_s10 = scalar_lea.vmem %s1556_s11, 256 }
  0x47   : > { %s432_s28 = scalar_lea.hbm %s2203_s1, %s1255_s29  ;;  %p1558_p9 = scmp.lt.s32.totalorder %s435_s12, %s1556_s11 }
  0x48   : > { %p1554_p8 = pneg %p1553_p4  ;;  %p1559_p10 = scmp.lt.s32.totalorder %s1557_s10, %s1550_s15 }
  0x4a   : > { %p1560_p13 = por %p1559_p10, %p1558_p9 }
  0x4c   : > { %p1561_p7 = pnand %p1560_p13, %p1554_p8 }
  0x4e   : > { %1564 = shalt.err (!%p1561_p7)
}
  0x4f   : > { %1405 = dma.hbm_to_vmem [thread:$0]  (!%p1954_p1), %s432_s28, 128, %s435_s12, %s1966_s17  }
  0x50   : > { %s1772_s19 = smov [#allocation12]   ;;  %s1773_s26 = smov [#allocation15]  }
  0x51   : > { %s355_s30 = sshll.u32 %s1772_s19, 4  ;;  %s387_s14 = sshll.u32 %s1773_s26, 4  ;;  %s356_s30 = int_to_ptr.vmem [resolvable:$true] %s355_s30  ;;  %s388_s14 = int_to_ptr.vmem [resolvable:$true] %s387_s14 }
  0x52   : > { %s1576_s3 = scalar_lea.vmem %s356_s30, 512  ;;  %p2204_p4 = pneg %p1884_p6 }
  0x53   : > { %p1577_p5 = scmp.ne.s32.totalorder %s356_s30, %s1576_s3  ;;  %p1584_p12 = scmp.lt.s32.totalorder %s356_s30, %s356_s30 }
  0x54   : > { %p1585_p9 = scmp.lt.s32.totalorder %s1576_s3, %s1576_s3 }
  0x55   : > { %p1579_p0 = pnand %p1577_p5, %p2204_p4 }
  0x56   : > { %p1586_p8 = por %p1585_p9, %p1584_p12 }
  0x57   : > { %p1580_p2 = pneg %p1579_p0 }
  0x59   : > { %p1587_p7 = pnand %p1586_p8, %p1580_p2 }
  0x5b   : > { %1590 = shalt.err (!%p1587_p7)
}
  0x5c   : > { %s2205_s10 = smov 8   ;;  %s2206_s11 = smov 128  }
  0x5d   : > { %s2207_s5 = sld [smem:[#allocation30_spill]]  ;;  %s1602_s28 = scalar_lea.vmem %s388_s14, 512 }
  0x5e   : > { %p1603_p10 = scmp.ne.s32.totalorder %s388_s14, %s1602_s28  ;;  %p2208_p0 = pmov %p2204_p4 }
  0x5f   : > { %p1610_p12 = scmp.lt.s32.totalorder %s388_s14, %s388_s14  ;;  %p1611_p2 = scmp.lt.s32.totalorder %s1602_s28, %s1602_s28 }
  0x60   : > { %p1605_p13 = pnand %p1603_p10, %p2208_p0 }
  0x61   : > { %p1612_p4 = por %p1611_p2, %p1610_p12 }
  0x62   : > { %p1606_p5 = pneg %p1605_p13 }
  0x63   : > { %1392 = dma.hbm_to_vmem [thread:$0]  (!%p1884_p6), %s2207_s5, 512, %s356_s30, [#allocation11], %s2206_s11, %s2206_s11, %s2205_s10  }
  0x64   : > { %p1613_p9 = pnand %p1612_p4, %p1606_p5 }
  0x66   : > { %1616 = shalt.err (!%p1613_p9)
}
  0x67   : > { %1398 = dma.hbm_to_vmem [thread:$0]  (!%p1884_p6), %s2163_s9, 512, %s388_s14, [#allocation14], %s2206_s11, %s2206_s11, %s2205_s10  }
  0x68   : > { %s414_s26 = scalar_lea.hbm %s2154_s0, %s1255_s29  ;;  %s2209_s22 = sshll.u32 %s1948_s13, 3 }
  0x69   : > { %s408_s12 = scalar_lea.vmem [#allocation4], %s2209_s22  ;;  %s1258_s28 = sshll.u32 %s1948_s13, 2 }
  0x6a   : > { %s416_s27 = sshll.u32 %s408_s12, 4  ;;  %s405_s1 = scalar_lea.sflag [#allocation5], %s1948_s13  ;;  %s417_s27 = int_to_ptr.vmem [resolvable:$true] %s416_s27 }
  0x6b   : > { %s1630_s5 = scalar_lea.vmem %s417_s27, 128  ;;  %p2210_p7 = pneg %p1954_p1 }
  0x6c   : > { %p1631_p8 = scmp.ne.s32.totalorder %s417_s27, %s1630_s5  ;;  %s1774_s3 = smov [#allocation4]  }
  0x6d   : > { %s1635_s15 = sshll.u32 %s1774_s3, 4  ;;  %s1636_s15 = int_to_ptr.vmem [resolvable:$false] %s1635_s15 }
  0x6e   : > { %p1633_p10 = pnand %p1631_p8, %p2210_p7  ;;  %s1637_s14 = scalar_lea.vmem %s1636_s15, 256 }
  0x6f   : > { %p1638_p6 = scmp.lt.s32.totalorder %s417_s27, %s1636_s15  ;;  %p1639_p13 = scmp.lt.s32.totalorder %s1637_s14, %s1630_s5 }
  0x70   : > { %p1634_p0 = pneg %p1633_p10 }
  0x71   : > { %p1640_p5 = por %p1639_p13, %p1638_p6 }
  0x73   : > { %p1641_p12 = pnand %p1640_p5, %p1634_p0 }
  0x75   : > { %1644 = shalt.err (!%p1641_p12)
}
  0x76   : > { %1402 = dma.hbm_to_vmem [thread:$0]  (!%p1954_p1), %s414_s26, 128, %s417_s27, %s405_s1  }
  0x77   : > { %s1259_s13 = sshll.u32 %s1761_s21, 6  ;;  %s445_s29 = scalar_lea.vmem [#allocation9], %s1258_s28 }
  0x78   : > { %s453_s10 = sshll.u32 %s445_s29, 4  ;;  %s451_s30 = scalar_lea.hbm %s2156_s2, %s1259_s13  ;;  %s454_s10 = int_to_ptr.vmem [resolvable:$true] %s453_s10 }
  0x79   : > { %s1658_s22 = scalar_lea.vmem %s454_s10, 64  ;;  %p2211_p4 = pmov %p2210_p7 }
  0x7a   : > { %p1659_p2 = scmp.ne.s32.totalorder %s454_s10, %s1658_s22  ;;  %s1775_s5 = smov [#allocation9]  }
  0x7b   : > { %s1663_s12 = sshll.u32 %s1775_s5, 4  ;;  %s1664_s12 = int_to_ptr.vmem [resolvable:$false] %s1663_s12 }
  0x7c   : > { %p1661_p9 = pnand %p1659_p2, %p2211_p4  ;;  %s1665_s3 = scalar_lea.vmem %s1664_s12, 128 }
  0x7d   : > { %p1666_p7 = scmp.lt.s32.totalorder %s454_s10, %s1664_s12  ;;  %p1667_p10 = scmp.lt.s32.totalorder %s1665_s3, %s1658_s22 }
  0x7e   : > { %p1662_p8 = pneg %p1661_p9 }
  0x7f   : > { %p1668_p0 = por %p1667_p10, %p1666_p7 }
  0x81   : > { %p1669_p6 = pnand %p1668_p0, %p1662_p8 }
  0x83   : > { %1672 = shalt.err (!%p1669_p6)
}
  0x84   : > { %1408 = dma.hbm_to_vmem [thread:$0]  (!%p1954_p1), %s451_s30, 64, %s454_s10, %s1966_s17  }
  0x85   : > { %462 = sbr.rel (%p1875_p3) target bundleno = 1121 (0x461), region = 64  ;;  %s2025_s1 = sand.u32 (!%p1875_p3), 1, %s1749_s18  }
  0x86   : > { %s2028_s26 = sshll.u32 (!%p1875_p3), %s2025_s1, 3  ;;  %s465_s27 = scalar_lea.sflag (!%p1875_p3), [#allocation5], %s2025_s1 }
  0x87   : > { %s468_s28 = scalar_lea.vmem (!%p1875_p3), [#allocation4], %s2028_s26 }
  0x8a   : > { %1724 = dma.done.wait (%p1931_p11), %s465_s27, 128  }
  0x8b   : > { %1726 = vsyncadd (%p1931_p11), %s465_s27, 4294967168  ;;  %s473_s7 = sand.u32 1, %s1870_s23   ;;  %s477_s24 = scalar_lea.vmem [#allocation7], %s2028_s26 }
  0x8c   : > { %s474_s17 = scalar_lea.sflag [#allocation8], %s473_s7 }
  0x8d   : > { %1728 = dma.done.wait (%p1931_p11), %s474_s17, 192  }
  0x8e   : > { %1730 = vsyncadd (%p1931_p11), %s474_s17, 4294967104  ;;  %s1263_s15 = sshll.u32 %s2025_s1, 2  ;;  %p2212_p1 = scmp.eq.s32.totalorder %s1870_s23, 0 }
  0x8f   : > { %s2043_s14 = scalar_lea.vmem [#allocation9], %s1263_s15 }
  0x90   : > { %1732 = dma.done.wait (%p2212_p1), [#allocation11], 1024   ;;  %p2213_p3 = pmov %p2212_p1 }
  0x91   : > { %p2214_p13 = pmov %p2212_p1 }
  0x92   : > { %1734 = vsyncadd (%p2213_p3), [#allocation11], 4294966272 }
  0x93   : > { %1736 = dma.done.wait (%p2214_p13), [#allocation14], 1024   ;;  %p2215_p5 = pmov %p2212_p1 }
  0x94   : > { %v1776_v0 = vmov 0.0   ;;  %vm1777_vm0 = vmmov 0   ;;  %v559_v1 = vld [vmem:[#allocation12 + $0x18] sm:$0xff]  ;;  %v558_v2 = vld [vmem:[#allocation12 + $0x10] sm:$0xff]  ;;  %v557_v3 = vld [vmem:[#allocation12 + $0x8] sm:$0xff]  ;;  %vm567_vm1 = vcmask 261120  }
  0x95   : > { %1738 = vsyncadd (%p2215_p5), [#allocation14], 4294966272  ;;  %1308 = vmatprep.subr.mxu0 %v1776_v0  ;;  %1316 = vmatprep.mubr.msk.f32.mxu0 %vm1777_vm0, %v1776_v0  ;;  %v556_v4 = vld [vmem:[#allocation12] sm:$0xff]  ;;  %v555_v5 = vld [vmem:[%s477_s24] sm:$0xff]  ;;  %vm890_vm2 = vcmask 64512   ;;  %s2216_s22 = sld [smem:[#allocation32_spill]] }
  0x96   : > { %1319 = vmatprep.subr.mxu1 %v1776_v0  ;;  %1327 = vmatprep.mubr.msk.f32.mxu1 %vm1777_vm0, %v1776_v0  ;;  %v728_v6 = vld [vmem:[#allocation10 + $0x18] sm:$0xff]  ;;  %v727_v7 = vld [vmem:[#allocation10 + $0x10] sm:$0xff]  ;;  %v726_v8 = vld [vmem:[#allocation10 + $0x8] sm:$0xff]  ;;  %s1281_s5 = sshll.u32 %s1757_s20, 7  ;;  %s550_s12 = scalar_lea.vmem [#allocation16], %s2028_s26 }
  0x97   : > { %1309 = vmatpush3.msra.mxu0 %v559_v1  ;;  %v725_v9 = vld [vmem:[#allocation10] sm:$0xff]  ;;  %v645_v11 = vld [vmem:[#allocation13 + $0x18] sm:$0xff]  ;;  %v644_v12 = vld [vmem:[#allocation13 + $0x10] sm:$0xff]  ;;  %s1084_s3 = sshll.u32 %s550_s12, 4  ;;  %s2217_s7 = sld [smem:[#allocation33_spill]]  ;;  %s1085_s3 = int_to_ptr.vmem [resolvable:$true] %s1084_s3 }
  0x98   : > { %1310 = vmatprep.subr.mxu0 %v1776_v0  ;;  %v724_v10 = vld [vmem:[%s468_s28] sm:$0xff]  ;;  %1320 = vmatpush3.msra.mxu1 %v645_v11  ;;  %v643_v13 = vld [vmem:[#allocation13 + $0x8] sm:$0xff]  ;;  %v986_v41 = vld [vmem:[#allocation15 + $0x10] sm:$0xff]  ;;  %s1070_s24 = scalar_lea.sflag [#allocation6], %s2025_s1  ;;  %s1673_s15 = scalar_lea.vmem %s1085_s3, 128 }
  0x99   : > { %1311 = vmatpush3.msra.mxu0 %v558_v2  ;;  %1321 = vmatprep.subr.mxu1 %v1776_v0  ;;  %v642_v14 = vld [vmem:[#allocation13] sm:$0xff]  ;;  %v1269_v15 = vld [vmem:[%s2160_s6] ss:$0 sm:$0xff]  ;;  %v812_v29 = vld [vmem:[%s2043_s14] sm:$0xf]  ;;  %p1674_p11 = scmp.ne.s32.totalorder %s1085_s3, %s1673_s15  ;;  %p2218_p12 = scmp.ne.s32.totalorder %s2198_s25, 0 }
  0x9a   : > { %1312 = vmatprep.subr.mxu0 %v1776_v0  ;;  %1322 = vmatpush3.msra.mxu1 %v644_v12  ;;  %v1273_v19 = vld [vmem:[%s2158_s4] ss:$0 sm:$0xff]  ;;  %v813_v30 = vunpack.c.l.bf16 %v812_v29  ;;  %v987_v40 = vld [vmem:[#allocation15 + $0x18] sm:$0xff]  ;;  %v984_v43 = vld [vmem:[#allocation15] sm:$0xff]  ;;  %s1778_s20 = smov [#allocation16]  }
  0x9b   : > { %1313 = vmatpush3.msra.mxu0 %v557_v3  ;;  %1323 = vmatprep.subr.mxu1 %v1776_v0  ;;  %v1271_v24 = vld [vmem:[%s2162_s8] ss:$0 sm:$0xff]  ;;  %p1675_p2 = pnand %p1674_p11, %p2218_p12  ;;  %s1677_s26 = sshll.u32 %s1778_s20, 4  ;;  %s1678_s26 = int_to_ptr.vmem [resolvable:$false] %s1677_s26 }
  0x9c   : > { %1314 = vmatprep.subr.mxu0 %v1776_v0  ;;  %1324 = vmatpush3.msra.mxu1 %v643_v13  ;;  %v985_v42 = vld [vmem:[#allocation15 + $0x8] sm:$0xff]  ;;  %s1679_s14 = scalar_lea.vmem %s1678_s26, 256  ;;  %p1680_p9 = scmp.lt.s32.totalorder %s1085_s3, %s1678_s26 }
  0x9d   : > { %1315 = vmatpush3.msra.mxu0 %v556_v4  ;;  %1325 = vmatprep.subr.mxu1 %v1776_v0  ;;  %v1278_v58 = vld [vmem:[%s2216_s22] ss:$0 sm:$0xff]  ;;  %s2111_s17 = scalar_lea.hbm %s2217_s7, %s1281_s5  ;;  %p1676_p4 = pneg %p1675_p2 }
  0x9e   : > { %1317 = vmatmul.mubr.msk.f32.vlgmr.msra.gmra.mxu0 %vm567_vm1, %v555_v5  ;;  %1330 = vmatprep.subr.mxu0 %v1776_v0  ;;  %p1681_p8 = scmp.lt.s32.totalorder %s1679_s14, %s1673_s15 }
  0x9f   : > { %1331 = vmatpush3.msra.mxu0 %v728_v6  ;;  %1338 = vmatprep.mubr.msk.f32.mxu0 %vm1777_vm0, %v1776_v0 }
  0xa0   : > { %1332 = vmatprep.subr.mxu0 %v1776_v0  ;;  %1326 = vmatpush3.msra.mxu1 %v642_v14  ;;  %p1682_p7 = por %p1681_p8, %p1680_p9 }
  0xa1   : > { %1333 = vmatpush3.msra.mxu0 %v727_v7  ;;  %1328 = vmatmul.mubr.msk.f32.vlgmr.msra.gmra.mxu1 %vm567_vm1, %v555_v5 }
  0xa2   : > { %1334 = vmatprep.subr.mxu0 %v1776_v0  ;;  %1341 = vmatprep.subr.mxu1 %v1776_v0  ;;  %p1683_p10 = pnand %p1682_p7, %p1676_p4 }
  0xa3   : > { %1335 = vmatpush3.msra.mxu0 %v726_v8  ;;  %1343 = vmatprep.mubr.msk.f32.mxu1 %vm1777_vm0, %v1776_v0 }
  0xa4   : > { %1336 = vmatprep.subr.mxu0 %v1776_v0 }
  0xa5   : > { %1337 = vmatpush3.msra.mxu0 %v725_v9 }
  0xa6   : > { %1339 = vmatmul.mubr.msk.f32.vlgmr.msra.gmra.mxu0 %vm567_vm1, %v724_v10  ;;  %1351 = vmatprep.subr.mxu0 %v1776_v0 }
  0xa7   : > { %1359 = vmatprep.mubr.msk.f32.mxu0 %vm1777_vm0, %v1776_v0  ;;  %1352 = vmatpush3.msra.mxu0 %v987_v40 }
  0xa8   : > { %1353 = vmatprep.subr.mxu0 %v1776_v0 }
  0xa9   : > { %1354 = vmatpush3.msra.mxu0 %v986_v41 }
  0xaa   : > { %1355 = vmatprep.subr.mxu0 %v1776_v0 }
  0xab   : > { %1356 = vmatpush3.msra.mxu0 %v985_v42 }
  0xac   : > { %1357 = vmatprep.subr.mxu0 %v1776_v0 }
  0xad   : > { %1358 = vmatpush3.msra.mxu0 %v984_v43 }
 0x15e   : > { %v637_v16 = vpop.f32.mrf.mxu0 }
 0x15f   : > { %v638_v17 = vadd.f32 %v1269_v15, %v637_v16 }
 0x160   : > { %v1318_v18 = vpop.f32.mrf.mxu0 }
 0x161   : > { %641 = vst.msk [vmem:[#allocation2] sm:$0xff] %vm567_vm1, %v638_v17  ;;  %v719_v25 = vpop.f32.mrf.mxu1 }
 0x162   : > { %v720_v26 = vadd.f32 %v1271_v24, %v719_v25 }
 0x163   : > { %v1329_v27 = vpop.f32.mrf.mxu1 }
 0x164   : > { %723 = vst.msk [vmem:[#allocation3] sm:$0xff] %vm567_vm1, %v720_v26 }
 0x166   : > { %v806_v20 = vpop.f32.mrf.mxu0 }
 0x167   : > { %v807_v21 = vadd.f32 %v1273_v19, %v806_v20 }
 0x168   : > { %v810_v22 = vld [vmem:[#allocation2] sm:$0xff]  ;;  %v1340_v23 = vpop.f32.mrf.mxu0 }
 0x169   : > { %1342 = vmatpush3.xpose.msk.msra.mxu1 %vm567_vm1, %v810_v22 }
 0x16a   : > { %1346 = vmatprep.subr.mxu1 %v1776_v0 }
 0x16b   : > { %v811_v28 = vld [vmem:[#allocation3] sm:$0xff] }
 0x16c   : > { %1344 = vmatmul.mubr.msk.f32.vlgmr.msra.gmra.mxu1 %vm567_vm1, %v807_v21 }
 0x16d   : > { %1348 = vmatprep.mubr.msk.f32.mxu1 %vm1777_vm0, %v1776_v0  ;;  %1347 = vmatpush3.msra.mxu1 %v811_v28 }
 0x22c   : > { %v886_v31 = vpop.f32.mrf.mxu1 }
 0x22d   : > { %v887_v32 = vadd.f32 %v886_v31, %v813_v30 }
 0x22e   : > { %v1345_v33 = vpop.f32.mrf.mxu1 }
 0x22f   : > { %v891_v34 = vsel %vm890_vm2, %v887_v32, -inf }
 0x230   : > { %892 = vmax.xlane.f32.xlu0 %v891_v34 }
 0x2b9   : > { %v893_v35 = vpop.xlane.xlu0 %892 }
 0x2ba   : > { %v897_v36 = vsub.f32 %v887_v32, %v893_v35  ;;  %v894_v44 = vsub.f32 -inf, %v893_v35 }
 0x2bc   : > { %v898_v37 = vmul.f32 1.442695, %v897_v36  ;;  %v895_v45 = vmul.f32 1.442695, %v894_v44 }
 0x2be   : > { %1479 = vpow2.f32 %v898_v37 }
 0x2bf   : > { %1481 = vpow2.f32 %v895_v45 }
 0x2cb   : > { %v1480_v38 = vpop.eup %1479 }
 0x2cc   : > { %1349 = vmatmul.mubr.msk.f32.vlgmr.msra.gmra.mxu1 %vm890_vm2, %v1480_v38  ;;  %v901_v39 = vsel %vm890_vm2, %v1480_v38, 0.0  ;;  %v1482_v46 = vpop.eup %1481 }
 0x2cd   : > { %902 = vadd.xlane.f32.xlu0 %v901_v39  ;;  %v900_v48 = vmul.f32 0.0, %v1482_v46 }
 0x356   : > { %v903_v47 = vpop.xlane.xlu0 %902 }
 0x357   : > { %v904_v49 = vadd.f32 %v903_v47, %v900_v48 }
 0x359   : > { %1483 = vrcp.f32 %v904_v49 }
 0x366   : > { %v1484_v50 = vpop.eup %1483 }
 0x367   : > { %v980_v51 = vmul.f32 %v1484_v50, %v904_v49 }
 0x369   : > { %v981_v52 = vsub.f32 2.0, %v980_v51 }
 0x36b   : > { %v982_v55 = vmul.f32 %v1484_v50, %v981_v52 }
 0x38c   : > { %v974_v53 = vpop.f32.mrf.mxu1 }
 0x38d   : > { %v978_v54 = vadd.f32 %v974_v53, %v900_v48 }
 0x38e   : > { %v1350_v56 = vpop.f32.mrf.mxu1 }
 0x38f   : > { %v983_v57 = vmul.f32 %v982_v55, %v978_v54 }
 0x391   : > { %1360 = vmatmul.mubr.msk.f32.vlgmr.msra.gmra.mxu0 %vm567_vm1, %v983_v57 }
 0x451   : > { %v1064_v59 = vpop.f32.mrf.mxu0 }
 0x452   : > { %v1065_v60 = vadd.f32 %v1278_v58, %v1064_v59 }
 0x453   : > { %v1361_v61 = vpop.f32.mrf.mxu0 }
 0x454   : > { %1068 = vst.msk [vmem:[%s550_s12] sm:$0xff] %vm567_vm1, %v1065_v60 }
 0x455   : > { %1686 = shalt.err (!%p1683_p10)
}
 0x456   : > { %s1687_s23 = scalar_lea.hbm %s2111_s17, 128  ;;  %s1691_s13 = scalar_lea.hbm %s2217_s7, 256 }
 0x457   : > { %p1688_p0 = scmp.ne.s32.totalorder %s2111_s17, %s1687_s23  ;;  %p1692_p3 = scmp.lt.s32.totalorder %s2111_s17, %s2217_s7 }
 0x458   : > { %p1693_p13 = scmp.lt.s32.totalorder %s1691_s13, %s1687_s23 }
 0x459   : > { %p1689_p6 = pnand %p1688_p0, %p2218_p12 }
 0x45a   : > { %p1694_p5 = por %p1693_p13, %p1692_p3 }
 0x45b   : > { %p1690_p1 = pneg %p1689_p6 }
 0x45d   : > { %p1695_p11 = pnand %p1694_p5, %p1690_p1 }
 0x45f   : > { %1698 = shalt.err (!%p1695_p11)
}
 0x460   : > { %1384 = dma.vmem_to_hbm [thread:$0]  (%p2218_p12), %s1085_s3, 128, %s2111_s17, %s1070_s24  }
 0x461 PF: > { %s2219_s11 = sld [smem:[#allocation22_spill]] }
 0x462   : > { %s2220_s19 = sld [smem:[#allocation27_spill]] }
 0x463   : > { %s2221_s30 = sld [smem:[#allocation24_spill]] }
 0x467   : > { %s1096_s22 = sand.u32 1, %s2219_s11  }
 0x468   : > { %p2222_p2 = scmp.ne.s32.totalorder %s2220_s19, 0  ;;  %s1097_s5 = scalar_lea.sflag [#allocation6], %s1096_s22 }
 0x469   : > { %p2223_p4 = scmp.ge.s32.totalorder %s2221_s30, 2 }
 0x46b   : > { %p1410_p9 = pnand %p2223_p4, %p2222_p2 }
 0x46d   : > { %p1411_p8 = pneg %p1410_p9 }
 0x46f   : > { %1740 = dma.done.wait (%p1411_p8), %s1097_s5, 128  }
 0x470   : > { %1742 = vsyncadd (%p1411_p8), %s1097_s5, 4294967168  ;;  %s32_s22 = sadd.s32 1, %s2221_s30   ;;  %s2224_s12 = sld [smem:[#allocation23_spill]] }
 0x471   : > { %p29_p7 = scmp.ge.s32.totalorder %s32_s22, 4   ;;  %s2225_s19 = sld [smem:[#allocation26_spill]] }
 0x472   : > { %s2226_s25 = sld [smem:[#allocation25_spill]]  ;;  %s2227_s17 = smov %s1749_s18 }
 0x473   : > { %s2229_s20 = smov %s1761_s21 }
 0x474   :  { %31 = sbr.rel (!%p29_p7) target bundleno = 17 (0x11), region = 153 }
 0x476   : > { %s2228_s18 = smov %s2224_s12 }
 0x478   : > { %s2230_s21 = smov %s2226_s25 }
 0x479   :  { %1102 = vsyncpa [#allocation5], 1 }
 0x47a   :  { %1104 = vsyncpa [#allocation5 + $0x1], 1 }
 0x47b   :  { %1105 = vsyncpa [#allocation8], 1 }
 0x47c   :  { %1107 = vsyncpa [#allocation8 + $0x1], 1 }
 0x47d   :  { %1108 = vsyncpa [#allocation11], 1 }
 0x47e   :  { %1109 = vsyncpa [#allocation14], 1 }
 0x47f   :  { %1110 = vsyncpa [#allocation6], 1 }
 0x480   :  { %1112 = vsyncpa [#allocation6 + $0x1], 1 }

</bundles_post_ra>
